<compile_context>
chip_gen: v7x
topology: tpu7x:2x2x1
jax: 0.10.0
libtpu: 0.0.40
codegen_flags: <defaults>
</compile_context>

<pallas_src>
import functools
import math

import jax
import jax.numpy as jnp
from jax.experimental import pallas as pl
from jax.experimental.pallas import tpu as pltpu


def _mean_dim1_single_kernel(x_ref, o_ref, *, inv_c):
    # x_ref: (TN, C, TS), o_ref: (TN, 1, TS).  Whole channel axis in one tile.
    s = jnp.sum(x_ref[...].astype(jnp.float32), axis=1, keepdims=True)
    o_ref[...] = (s * inv_c).astype(o_ref.dtype)


def _mean_dim1_acc_kernel(x_ref, o_ref, acc_ref, *, inv_c):
    # x_ref  : (TN, TC, TS) input tile (original dtype)
    # o_ref  : (TN, 1, TS)  output tile
    # acc_ref: (TN, 1, TS)  f32 accumulator, resident across the C grid axis
    k = pl.program_id(2)

    @pl.when(k == 0)
    def _():
        acc_ref[...] = jnp.zeros_like(acc_ref)

    acc_ref[...] += jnp.sum(
        x_ref[...].astype(jnp.float32), axis=1, keepdims=True
    )

    @pl.when(k == pl.num_programs(2) - 1)
    def _():
        # Multiply by precomputed 1/C (no runtime divide), cast on final store.
        o_ref[...] = (acc_ref[...] * inv_c).astype(o_ref.dtype)


def _pick_tile(dim, unit, target):
    """Largest multiple of `unit` that divides `dim` and is <= `target`.
    Falls back to the full dim when `dim` isn't a multiple of `unit`
    (the 'equal to full array dim' escape hatch of the (8,128) rule)."""
    if dim % unit != 0:
        return dim
    best = unit
    m = unit
    while m <= dim and m <= target:
        if dim % m == 0:
            best = m
        m += unit
    return best


def _pick_batch_tile(n, bytes_per_row, budget_bytes):
    """Largest divisor of n whose input tile stays under `budget_bytes`."""
    best = 1
    for cand in range(1, n + 1):
        if n % cand != 0:
            continue
        if cand * bytes_per_row <= budget_bytes:
            best = cand
    return best


def mean_block(x, *, tile_s_target=2048, tile_c_target=32):
    """Equivalent of torch.mean(x, dim=1) for an N-D tensor (N, C, *spatial)."""
    N, C = x.shape[0], x.shape[1]
    spatial = x.shape[2:]
    S = int(math.prod(spatial)) if spatial else 1

    # Lane-dense layout: (N, C, S) with S as the trailing (lane) axis.
    # For a contiguous NCHW tensor this reshape is free (no data movement).
    x2 = x.reshape(N, C, S)

    tile_s = _pick_tile(S, 128, tile_s_target)   # lane-dense spatial tile
    tile_c = _pick_tile(C, 8, tile_c_target)     # channel (reduction) chunk
    n_s = S // tile_s
    n_c = C // tile_c

    # Pack several batch rows per tile (amortize per-grid-step overhead)
    # while keeping each double-buffered input tile comfortably inside VMEM.
    dtype_bytes = jnp.dtype(x.dtype).itemsize
    bytes_per_row = tile_c * tile_s * dtype_bytes
    tile_n = _pick_batch_tile(N, bytes_per_row, budget_bytes=4 << 20)
    n_n = N // tile_n

    inv_c = 1.0 / C
    compiler_params = pltpu.CompilerParams(
        dimension_semantics=("parallel", "parallel", "arbitrary"),
    )

    if n_c == 1:
        # Single-pass: whole channel axis in one tile, no accumulator scratch.
        kernel = functools.partial(_mean_dim1_single_kernel, inv_c=inv_c)
        scratch_shapes = []
    else:
        kernel = functools.partial(_mean_dim1_acc_kernel, inv_c=inv_c)
        scratch_shapes = [pltpu.VMEM((tile_n, 1, tile_s), jnp.float32)]

    out = pl.pallas_call(
        kernel,
        out_shape=jax.ShapeDtypeStruct((N, 1, S), x.dtype),
        grid_spec=pltpu.PrefetchScalarGridSpec(
            num_scalar_prefetch=0,
            # Spatial tiles lead (shards across TCs on v7x even for small N),
            # batch next, channel reduction innermost.
            grid=(n_s, n_n, n_c),
            in_specs=[
                pl.BlockSpec(
                    (tile_n, tile_c, tile_s), lambda s, n, k: (n, k, s)
                ),
            ],
            out_specs=pl.BlockSpec(
                (tile_n, 1, tile_s), lambda s, n, k: (n, 0, s)
            ),
            scratch_shapes=scratch_shapes,
        ),
        compiler_params=compiler_params,
    )(x2)

    return out.reshape((N,) + spatial)


if __name__ == "__main__":
    key = jax.random.PRNGKey(0)

    # Small shapes consistent with the module's forward (4-D NCHW input).
    x = jax.random.normal(key, (2, 4, 16, 16), dtype=jnp.float32)
    out = jax.block_until_ready(mean_block(x))
    ref = jnp.mean(x, axis=1)
    assert out.shape == ref.shape, (out.shape, ref.shape)
    assert jnp.allclose(out, ref, atol=1e-6, rtol=1e-6), "mismatch vs reference"

    # Also exercise the multi-chunk channel-accumulation path.
    key2 = jax.random.PRNGKey(1)
    x2 = jax.random.normal(key2, (2, 16, 8, 16), dtype=jnp.float32)
    out2 = jax.block_until_ready(mean_block(x2, tile_c_target=8))
    ref2 = jnp.mean(x2, axis=1)
    assert out2.shape == ref2.shape, (out2.shape, ref2.shape)
    assert jnp.allclose(out2, ref2, atol=1e-6, rtol=1e-6), "mismatch (acc path)"

    print("KERNEL_OK")
</pallas_src>

<mosaic_0001>
module attributes {stable_mosaic.version = 11 : i64} {
  func.func @_mean_dim1_single_kernel(%arg0: i32, %arg1: i32, %arg2: i32, %arg3: memref<2x4x256xf32, #tpu.memory_space<vmem>>, %arg4: memref<2x1x256xf32, #tpu.memory_space<vmem>>) attributes {dimension_semantics = [#tpu.dimension_semantics<parallel>, #tpu.dimension_semantics<parallel>, #tpu.dimension_semantics<arbitrary>], iteration_bounds = array<i64: 1, 1, 1>, scalar_prefetch = 0 : i64, scratch_operands = 0 : i64, tpu.core_type = #tpu.core_type<tc>, window_params = [{transform_indices = @transform_0, window_bounds = array<i64: 2, 4, 256>}, {transform_indices = @transform_1, window_bounds = array<i64: 2, 1, 256>}]} {
    %c0 = arith.constant 0 : index
    %c0_0 = arith.constant 0 : index
    %c0_1 = arith.constant 0 : index
    %0 = vector.load %arg3[%c0, %c0_0, %c0_1] : memref<2x4x256xf32, #tpu.memory_space<vmem>>, vector<2x4x256xf32>
    %cst = arith.constant dense<0.000000e+00> : vector<2x256xf32>
    %1 = vector.multi_reduction <add>, %0, %cst [1] : vector<2x4x256xf32> to vector<2x256xf32>
    %2 = vector.shape_cast %1 : vector<2x256xf32> to vector<2x1x256xf32>
    %cst_2 = arith.constant 2.500000e-01 : f32
    %3 = vector.broadcast %cst_2 : f32 to vector<2x1x256xf32>
    %4 = arith.mulf %2, %3 : vector<2x1x256xf32>
    %c0_3 = arith.constant 0 : index
    %c0_4 = arith.constant 0 : index
    %c0_5 = arith.constant 0 : index
    %5 = vector.load %arg4[%c0_3, %c0_4, %c0_5] : memref<2x1x256xf32, #tpu.memory_space<vmem>>, vector<2x1x256xf32>
    tpu.vector_store %arg4[%c0_3, %c0_4, %c0_5], %4 {strides = array<i32>} : memref<2x1x256xf32, #tpu.memory_space<vmem>>, vector<2x1x256xf32>,
    return
  }
  func.func @transform_0(%arg0: i32, %arg1: i32, %arg2: i32) -> (i32, i32, i32) {
    %c0_i32 = arith.constant 0 : i32
    return %arg1, %arg2, %arg0 : i32, i32, i32
  }
  func.func @transform_1(%arg0: i32, %arg1: i32, %arg2: i32) -> (i32, i32, i32) {
    %c0_i32 = arith.constant 0 : i32
    %c0_i32_0 = arith.constant 0 : i32
    return %arg1, %c0_i32, %arg0 : i32, i32, i32
  }
}

</mosaic_0001>

<bundles_post_ra>
// kernel: tpu_custom_call.1
= control target key start
LH: loop header
LB: loop body
LE: loop exit
PB: predicated region body
PF: predicated region fallthrough
CT: control target
= control target key end

     0   :  { %6 = vsyncpa [#allocation3], 0  ;;  %s221_s0 = inlined_call_operand.hbm [shape: f32[2,4,256], index: 0, kind: input, shape index: {}]   ;;  %s222_s1 = inlined_call_operand.hbm [shape: f32[2,1,256], index: 1, kind: output, shape index: {}]  }
   0x1   :  { %7 = vsyncpa [#allocation4], 0  ;;  %s180_s6 = smov [#allocation2]   ;;  %s132_s10 = scalar_lea.hbm %s221_s0, 256 }
   0x2   :  { %s13_s7 = sshll.u32 %s180_s6, 4  ;;  %p133_p0 = scmp.ne.s32.totalorder %s221_s0, %s132_s10  ;;  %s14_s7 = int_to_ptr.vmem [resolvable:$true] %s13_s7 }
   0x3   :  { %p136_p1 = scmp.lt.u32.totalorder %s132_s10, %s221_s0 }
   0x5   :  { %p138_p2 = pnand %p136_p1, %p133_p0 }
   0x7   :  { %141 = shalt.err (!%p138_p2)
}
   0x8   :  { %s142_s15 = scalar_lea.vmem %s14_s7, 256  ;;  %p147_p4 = scmp.lt.s32.totalorder %s14_s7, %s14_s7 }
   0x9   :  { %p143_p3 = scmp.ne.s32.totalorder %s14_s7, %s142_s15  ;;  %p148_p5 = scmp.lt.s32.totalorder %s142_s15, %s142_s15 }
   0xb   :  { %p149_p6 = por %p148_p5, %p147_p4 }
   0xd   :  { %p150_p7 = pnand %p149_p6, %p143_p3 }
   0xf   :  { %153 = shalt.err (!%p150_p7)
}
  0x10   :  { %s181_s16 = smov 128   ;;  %s182_s17 = smov 8  }
  0x11   :  { %19 = dma.hbm_to_vmem [thread:$0]  %s221_s0, 256, %s14_s7, [#allocation3], %s181_s16, %s181_s16, %s182_s17  }
  0x12   :  { %176 = dma.done.wait [#allocation3], 256  }
  0x13   :  { %177 = vsyncadd [#allocation3], 4294967040  ;;  %vm31_vm0 = vcmask 1043456   ;;  %v23_v0 = vld [vmem:[#allocation2] sm:$0xff]  ;;  %v24_v1 = vld [vmem:[#allocation2 + $0x8] sm:$0xff]  ;;  %v72_v20 = vlaneseq  ;;  %s184_s0 = smov [#allocation5]  }
  0x14   :  { %v27_v2 = vcombine.high %v23_v0, %v23_v0  ;;  %v32_v3 = vsel %vm31_vm0, %v23_v0, 0.0  ;;  %v28_v4 = vcombine.high %v24_v1, %v24_v1  ;;  %v46_v5 = vsel %vm31_vm0, %v24_v1, 0.0  ;;  %s111_s20 = sshll.u32 %s184_s0, 4  ;;  %s112_s20 = int_to_ptr.vmem [resolvable:$true] %s111_s20 }
  0x15   :  { %v33_v6 = vrot.slane %v32_v3, 4  ;;  %v47_v7 = vrot.slane %v46_v5, 4  ;;  %v183_v18 = vmov 1966171168   ;;  %v73_v30 = vshrl.u32 %v72_v20, 7  ;;  %s154_s21 = scalar_lea.vmem %s112_s20, 64  ;;  %p159_p9 = scmp.lt.s32.totalorder %s112_s20, %s112_s20 }
  0x16   :  { %v39_v8 = vsel %vm31_vm0, %v27_v2, 0.0  ;;  %v53_v9 = vsel %vm31_vm0, %v28_v4, 0.0  ;;  %v70_v19 = vunpack.c.l.s4 %v183_v18  ;;  %vm102_vm1 = vcmp.lt.s32.totalorder %v72_v20, 256  ;;  %p155_p8 = scmp.ne.s32.totalorder %s112_s20, %s154_s21  ;;  %p160_p10 = scmp.lt.s32.totalorder %s154_s21, %s154_s21 }
  0x17   :  { %v34_v10 = vadd.f32 %v33_v6, %v32_v3  ;;  %v40_v11 = vrot.slane %v39_v8, 4  ;;  %v48_v12 = vadd.f32 %v47_v7, %v46_v5  ;;  %v54_v13 = vrot.slane %v53_v9, 4 }
  0x18   :  { %v71_v29 = vunpack.c.0.s8 %v70_v19  ;;  %p161_p11 = por %p160_p10, %p159_p9 }
  0x19   :  { %v35_v14 = vrot.slane %v34_v10, 2  ;;  %v41_v15 = vadd.f32 %v40_v11, %v39_v8  ;;  %v49_v16 = vrot.slane %v48_v12, 2  ;;  %v55_v17 = vadd.f32 %v54_v13, %v53_v9 }
  0x1a   :  { %v74_v40 = vsub.s32 %v71_v29, %v73_v30  ;;  %p162_p12 = pnand %p161_p11, %p155_p8 }
  0x1b   :  { %v36_v21 = vadd.f32 %v35_v14, %v34_v10  ;;  %v42_v22 = vrot.slane %v41_v15, 2  ;;  %v50_v23 = vadd.f32 %v49_v16, %v48_v12  ;;  %v56_v24 = vrot.slane %v55_v17, 2 }
  0x1d   :  { %v37_v25 = vrot.slane %v36_v21, 1  ;;  %v43_v26 = vadd.f32 %v42_v22, %v41_v15  ;;  %v51_v27 = vrot.slane %v50_v23, 1  ;;  %v57_v28 = vadd.f32 %v56_v24, %v55_v17 }
  0x1f   :  { %v38_v31 = vadd.f32 %v37_v25, %v36_v21  ;;  %v44_v32 = vrot.slane %v43_v26, 1  ;;  %v52_v33 = vadd.f32 %v51_v27, %v50_v23  ;;  %v58_v34 = vrot.slane %v57_v28, 1 }
  0x21   :  { %v45_v35 = vadd.f32 %v44_v32, %v43_v26  ;;  %v60_v36 = vmul.f32 0.25, %v38_v31  ;;  %v59_v37 = vadd.f32 %v58_v34, %v57_v28  ;;  %v62_v38 = vmul.f32 0.25, %v52_v33 }
  0x23   :  { %v61_v39 = vmul.f32 0.25, %v45_v35  ;;  %v63_v41 = vmul.f32 0.25, %v59_v37 }
  0x25   :  { %v68_v42 = vcombine.low %v60_v36, %v61_v39  ;;  %v83_v43 = vcombine.low %v62_v38, %v63_v41 }
  0x27   :  { %v75_v44 = vrot.slane %v68_v42, %v74_v40  ;;  %v90_v45 = vrot.slane %v83_v43, %v74_v40 }
  0x29   :  { %v82_v46 = vrot.slane %v75_v44, %v74_v40  ;;  %v97_v47 = vrot.slane %v90_v45, %v74_v40 }
  0x2b   :  { %104 = vst.msk [vmem:[#allocation5] sm:$0x3] %vm102_vm1, %v82_v46  ;;  %105 = vst.msk [vmem:[#allocation5 + $0x2] sm:$0x3] %vm102_vm1, %v97_v47 }
  0x2c   :  { %165 = shalt.err (!%p162_p12)
}
  0x2d   :  { %s166_s24 = scalar_lea.hbm %s222_s1, 64 }
  0x2e   :  { %p167_p13 = scmp.ne.s32.totalorder %s222_s1, %s166_s24  ;;  %p170_p0 = scmp.lt.u32.totalorder %s166_s24, %s222_s1 }
  0x30   :  { %p172_p1 = pnand %p170_p0, %p167_p13 }
  0x32   :  { %175 = shalt.err (!%p172_p1)
}
  0x33   :  { %s185_s29 = smov 32   ;;  %s186_s30 = smov 2  }
  0x34   :  { %117 = dma.vmem_to_hbm [thread:$0]  %s112_s20, 64, %s222_s1, [#allocation4], %s185_s29, %s185_s29, %s186_s30  }
  0x35   :  { %178 = dma.done.wait [#allocation4], 64  }
  0x36   :  { %179 = vsyncadd [#allocation4], 4294967232 }
  0x37   :  { %121 = vsyncpa [#allocation3], 1 }
  0x38   :  { %122 = vsyncpa [#allocation4], 1 }

</bundles_post_ra>
